<compile_context>
chip_gen: v5e
topology: v5e:2x2
jax: 0.10.0
libtpu: 0.0.40
codegen_flags: <defaults>
</compile_context>

<pallas_src>
import math

import jax
import jax.numpy as jnp
from jax.experimental import pallas as pl
from jax.experimental.pallas import tpu as pltpu

SQRT2_OVER_4 = math.sqrt(2.0) / 4.0


def _round_up(x, m):
    return (x + m - 1) // m * m


# ----------------------------------------------------------------------------
# D8 irrep weight expansion (parameter setup -> plain JAX glue)
# ----------------------------------------------------------------------------
def _rot90(w, k):
    return jnp.rot90(w, k=k, axes=(-2, -1))


def expand_weight(w, irrep):
    """w: (outs, C, P//2, P//2) -> (outs, C, P, P), mirrors LiftIrrepD8Conv2d.expand_weight."""
    if irrep == "E":
        w = 0.5 * w
        w2 = jnp.concatenate([w, jnp.flip(w, axis=-2)], axis=-2)
        return jnp.concatenate([w2, -jnp.flip(w2, axis=-1)], axis=-1)
    w = SQRT2_OVER_4 * w
    w_rot = _rot90(w, 1)
    w_rot2 = _rot90(w, 2)
    w_rot3 = _rot90(w, 3)
    if irrep in ("A1", "A2"):
        weight = jnp.concatenate(
            [jnp.concatenate([w, w_rot], axis=-2),
             jnp.concatenate([w_rot3, w_rot2], axis=-2)], axis=-1)
    else:  # B1, B2
        weight = jnp.concatenate(
            [jnp.concatenate([w, -w_rot], axis=-2),
             jnp.concatenate([-w_rot3, w_rot2], axis=-2)], axis=-1)
    if irrep in ("A1", "B1"):
        return weight + jnp.flip(weight, axis=-1)
    return weight - jnp.flip(weight, axis=-1)


# ----------------------------------------------------------------------------
# Pallas kernel: fused patch-matmul + bias  (the hot path)
# ----------------------------------------------------------------------------
def _patch_embed_kernel(p_ref, w_ref, b_ref, o_ref):
    acc = jnp.dot(p_ref[...], w_ref[...], preferred_element_type=jnp.float32)
    o_ref[...] = (acc + b_ref[...]).astype(o_ref.dtype)


def patch_matmul(patches, w_all, bias_all):
    """patches: (M, K), w_all: (K, Nout), bias_all: (1, Nout) f32 -> (M, Nout) f32."""
    M, K = patches.shape
    K2, Nout = w_all.shape
    assert K == K2 and bias_all.shape == (1, Nout)

    # M tiling: large MXU-friendly tiles, pad the tail instead of a giant block.
    tm = min(512, _round_up(M, 8))
    M_pad = _round_up(M, tm)

    # Nout tiling: only split when a full-width block would be too big.
    tn = Nout
    if Nout > 1024:
        for cand in (1024, 512, 256):
            if Nout % cand == 0:
                tn = cand
                break

    patches_bf16 = patches.astype(jnp.bfloat16)
    if M_pad != M:
        patches_bf16 = jnp.pad(patches_bf16, ((0, M_pad - M), (0, 0)))
    w_bf16 = w_all.astype(jnp.bfloat16)
    bias_f32 = bias_all.astype(jnp.float32)

    grid = (M_pad // tm, Nout // tn)
    cost = pl.CostEstimate(
        flops=2 * M_pad * K * Nout,
        transcendentals=0,
        bytes_accessed=M_pad * K * 2 + K * Nout * 2 + Nout * 4 + M_pad * Nout * 4,
    )

    out = pl.pallas_call(
        _patch_embed_kernel,
        out_shape=jax.ShapeDtypeStruct((M_pad, Nout), jnp.float32),
        grid_spec=pltpu.PrefetchScalarGridSpec(
            num_scalar_prefetch=0,
            grid=grid,
            in_specs=[
                pl.BlockSpec((tm, K), lambda i, j: (i, 0)),
                pl.BlockSpec((K, tn), lambda i, j: (0, j)),
                pl.BlockSpec((1, tn), lambda i, j: (0, j)),
            ],
            out_specs=pl.BlockSpec((tm, tn), lambda i, j: (i, j)),
        ),
        compiler_params=pltpu.CompilerParams(
            dimension_semantics=("parallel", "parallel"),
        ),
        cost_estimate=cost,
    )(patches_bf16, w_bf16, bias_f32)
    return out[:M] if M_pad != M else out


# ----------------------------------------------------------------------------
# PatchEmbedD8 forward (glue around the kernel)
# ----------------------------------------------------------------------------
def build_expanded_weights(params):
    """Returns 8 expanded (outs, C, P, P) conv weights.

    Column order chosen so the E output re-packs into (B, N, 2, 2*outs) with a
    single reshape: [A1, A2, B1, B2, E_left0, E_right0, E_left1, E_right1].
    """
    w_A1 = expand_weight(params["w_A1"], "A1")
    w_A2 = expand_weight(params["w_A2"], "A2")
    w_B1 = expand_weight(params["w_B1"], "B1")
    w_B2 = expand_weight(params["w_B2"], "B2")
    w_El = expand_weight(params["w_El"], "E")
    w_Er = expand_weight(params["w_Er"], "E")
    return [w_A1, w_A2, w_B1, w_B2, w_El, w_Er, _rot90(w_El, 1), _rot90(w_Er, 1)]


def patch_embed_d8_forward(x, params, patch_size):
    """x: (B, C, H, W) NCHW. Returns (A1, A2, B1, B2, E):
    4 x (B, N, outs) and (B, N, 2, 2*outs), matching the PyTorch module."""
    B, C, H, W = x.shape
    P = patch_size
    assert H % P == 0 and W % P == 0
    Hg, Wg = H // P, W // P
    N = Hg * Wg

    ws = build_expanded_weights(params)
    outs = ws[0].shape[0]
    # (K, 8*outs): flatten each (outs, C, P, P) -> (outs, C*P*P), transpose, concat columns.
    w_all = jnp.concatenate([w.reshape(outs, -1).T for w in ws], axis=1)
    bias_all = jnp.zeros((1, 8 * outs), jnp.float32).at[0, :outs].set(params["b_A1"])

    # Patch extraction: (B,C,H,W) -> (B,Hg,Wg,C,P,P) -> (B*N, C*P*P).
    # bf16 before the big transpose halves its HBM traffic.
    patches = (
        x.astype(jnp.bfloat16)
        .reshape(B, C, Hg, P, Wg, P)
        .transpose(0, 2, 4, 1, 3, 5)
        .reshape(B * N, C * P * P)
    )

    y = patch_matmul(patches, w_all, bias_all)          # (B*N, 8*outs) f32
    y = y.reshape(B, N, 8 * outs)
    a1 = y[..., 0 * outs:1 * outs]
    a2 = y[..., 1 * outs:2 * outs]
    b1 = y[..., 2 * outs:3 * outs]
    b2 = y[..., 3 * outs:4 * outs]
    # Column order [El0, Er0, El1, Er1] -> (B, N, 2, 2*outs) is a pure reshape.
    e = y[..., 4 * outs:].reshape(B, N, 2, 2 * outs)
    # norm_layer=None -> Identity
    return (a1, a2, b1, b2, e)


# ----------------------------------------------------------------------------
# Pure-JAX reference (lax.conv, f32) for correctness checking
# ----------------------------------------------------------------------------
def reference_forward(x, params, patch_size):
    B, C, H, W = x.shape
    P = patch_size
    w_A1 = expand_weight(params["w_A1"], "A1")
    w_A2 = expand_weight(params["w_A2"], "A2")
    w_B1 = expand_weight(params["w_B1"], "B1")
    w_B2 = expand_weight(params["w_B2"], "B2")
    w_El = expand_weight(params["w_El"], "E")
    w_Er = expand_weight(params["w_Er"], "E")
    ws = [w_A1, w_A2, w_B1, w_B2, w_El, _rot90(w_El, 1), w_Er, _rot90(w_Er, 1)]
    outs = ws[0].shape[0]
    flat = []
    for i, w in enumerate(ws):
        y = jax.lax.conv_general_dilated(
            x, w, window_strides=(P, P), padding="VALID",
            dimension_numbers=("NCHW", "OIHW", "NCHW"))
        if i == 0:
            y = y + params["b_A1"][None, :, None, None]
        flat.append(y.reshape(B, outs, -1).transpose(0, 2, 1))  # flatten(2).transpose(1,2)
    e = jnp.concatenate(
        [jnp.stack(flat[4:6], axis=-2), jnp.stack(flat[6:8], axis=-2)], axis=-1)
    return (flat[0], flat[1], flat[2], flat[3], e)


# ----------------------------------------------------------------------------
# Deterministic parameter init (synthetic; mirrors shapes of the module __init__)
# ----------------------------------------------------------------------------
def init_params(key, in_chans, embed_dim, patch_size):
    outs = embed_dim // 8
    hp = patch_size // 2
    fan_in = in_chans * hp * hp
    gain = math.sqrt(2.0 / (1.0 + 5.0))     # kaiming_uniform_(a=sqrt(5))
    w_bound = math.sqrt(3.0) * gain / math.sqrt(fan_in)
    b_bound = 1.0 / math.sqrt(fan_in)
    keys = jax.random.split(key, 7)
    shape = (outs, in_chans, hp, hp)
    return {
        "w_A1": jax.random.uniform(keys[0], shape, jnp.float32, -w_bound, w_bound),
        "w_A2": jax.random.uniform(keys[1], shape, jnp.float32, -w_bound, w_bound),
        "w_B1": jax.random.uniform(keys[2], shape, jnp.float32, -w_bound, w_bound),
        "w_B2": jax.random.uniform(keys[3], shape, jnp.float32, -w_bound, w_bound),
        "w_El": jax.random.uniform(keys[4], shape, jnp.float32, -w_bound, w_bound),
        "w_Er": jax.random.uniform(keys[5], shape, jnp.float32, -w_bound, w_bound),
        "b_A1": jax.random.uniform(keys[6], (outs,), jnp.float32, -b_bound, b_bound),
    }


if __name__ == "__main__":
    # Small config consistent with the module: even patch size, embed_dim % 8 == 0.
    B, C, H, W = 2, 3, 16, 16
    patch_size = 4
    embed_dim = 32  # -> outs = 4 per irrep branch

    key = jax.random.PRNGKey(0)
    k_x, k_p = jax.random.split(key)
    x = jax.random.normal(k_x, (B, C, H, W), jnp.float32)
    params = init_params(k_p, C, embed_dim, patch_size)

    out = patch_embed_d8_forward(x, params, patch_size)
    out = jax.block_until_ready(out)

    ref = reference_forward(x, params, patch_size)
    # bf16 MXU inputs vs. f32 conv reference -> slightly looser tolerance.
    for a, b in zip(out, ref):
        assert a.shape == b.shape, (a.shape, b.shape)
        if not jnp.allclose(a, b, atol=3e-2, rtol=3e-2):
            raise AssertionError("Pallas kernel output mismatch vs lax.conv reference")

    N = (H // patch_size) * (W // patch_size)
    outs = embed_dim // 8
    assert out[0].shape == (B, N, outs)
    assert out[4].shape == (B, N, 2, 2 * outs)

    print("KERNEL_OK")
</pallas_src>

<mosaic_0001>
module attributes {stable_mosaic.version = 11 : i64} {
  func.func @_patch_embed_kernel(%arg0: i32, %arg1: i32, %arg2: memref<32x48xbf16, #tpu.memory_space<vmem>>, %arg3: memref<48x32xbf16, #tpu.memory_space<vmem>>, %arg4: memref<1x32xf32, #tpu.memory_space<vmem>>, %arg5: memref<32x32xf32, #tpu.memory_space<vmem>>) attributes {dimension_semantics = [#tpu.dimension_semantics<parallel>, #tpu.dimension_semantics<parallel>], iteration_bounds = array<i64: 1, 1>, scalar_prefetch = 0 : i64, scratch_operands = 0 : i64, tpu.core_type = #tpu.core_type<tc>, window_params = [{transform_indices = @transform_0, window_bounds = array<i64: 32, 48>}, {transform_indices = @transform_1, window_bounds = array<i64: 48, 32>}, {transform_indices = @transform_2, window_bounds = array<i64: 1, 32>}, {transform_indices = @transform_3, window_bounds = array<i64: 32, 32>}]} {
    %c0 = arith.constant 0 : index
    %c0_0 = arith.constant 0 : index
    %0 = vector.load %arg2[%c0, %c0_0] : memref<32x48xbf16, #tpu.memory_space<vmem>>, vector<32x48xbf16>
    %c0_1 = arith.constant 0 : index
    %c0_2 = arith.constant 0 : index
    %1 = vector.load %arg3[%c0_1, %c0_2] : memref<48x32xbf16, #tpu.memory_space<vmem>>, vector<48x32xbf16>
    %cst = arith.constant dense<0.000000e+00> : vector<32x32xf32>
    %2 = tpu.matmul %0, %1, %cst {dimension_numbers = #tpu.dot_dimension_numbers<[1], [0], [0], [1], [0, 0, 1, 1], [], []>} : vector<32x48xbf16>, vector<48x32xbf16>, vector<32x32xf32> -> vector<32x32xf32>
    %c0_3 = arith.constant 0 : index
    %c0_4 = arith.constant 0 : index
    %3 = vector.load %arg4[%c0_3, %c0_4] : memref<1x32xf32, #tpu.memory_space<vmem>>, vector<1x32xf32>
    %4 = vector.broadcast %3 : vector<1x32xf32> to vector<32x32xf32>
    %5 = arith.addf %2, %4 : vector<32x32xf32>
    %c0_5 = arith.constant 0 : index
    %c0_6 = arith.constant 0 : index
    %6 = vector.load %arg5[%c0_5, %c0_6] : memref<32x32xf32, #tpu.memory_space<vmem>>, vector<32x32xf32>
    tpu.vector_store %arg5[%c0_5, %c0_6], %5 {strides = array<i32>} : memref<32x32xf32, #tpu.memory_space<vmem>>, vector<32x32xf32>,
    return
  }
  func.func @transform_0(%arg0: i32, %arg1: i32) -> (i32, i32) {
    %c0_i32 = arith.constant 0 : i32
    %c0_i32_0 = arith.constant 0 : i32
    return %arg0, %c0_i32 : i32, i32
  }
  func.func @transform_1(%arg0: i32, %arg1: i32) -> (i32, i32) {
    %c0_i32 = arith.constant 0 : i32
    %c0_i32_0 = arith.constant 0 : i32
    return %c0_i32, %arg1 : i32, i32
  }
  func.func @transform_2(%arg0: i32, %arg1: i32) -> (i32, i32) {
    %c0_i32 = arith.constant 0 : i32
    %c0_i32_0 = arith.constant 0 : i32
    return %c0_i32, %arg1 : i32, i32
  }
  func.func @transform_3(%arg0: i32, %arg1: i32) -> (i32, i32) {
    %c0_i32 = arith.constant 0 : i32
    return %arg0, %arg1 : i32, i32
  }
}

</mosaic_0001>

<bundles_post_ra>
// kernel: tpu_custom_call.1
= control target key start
LH: loop header
LB: loop body
LE: loop exit
PB: predicated region body
PF: predicated region fallthrough
CT: control target
= control target key end

     0   :  { %s215_s0 = inlined_call_operand.vmem [shape: bf16[32,48], index: 0, kind: input, shape index: {}]   ;;  %s216_s1 = inlined_call_operand.vmem [shape: bf16[48,32], index: 1, kind: input, shape index: {}]   ;;  %s217_s2 = inlined_call_operand.vmem [shape: f32[1,32], index: 2, kind: input, shape index: {}]   ;;  %s218_s3 = inlined_call_operand.hbm [shape: f32[32,32], index: 3, kind: output, shape index: {}]  }
   0x1   :  { %v133_v0 = vld [vmem:[%s216_s1 + $0x10] sm:$0xff]  ;;  %v132_v1 = vld [vmem:[%s216_s1 + $0x8] sm:$0xff] }
   0x2   :  { %70 = vmatpush.bf16.msra.mxu0 %v133_v0  ;;  %134 = vmatpush.bf16.msra.mxu1 %v133_v0 }
   0x3   :  { %8 = vsyncpa [#allocation3], 0  ;;  %v131_v2 = vld [vmem:[%s216_s1] sm:$0xff]  ;;  %v130_v4 = vld [vmem:[%s215_s0 + $0x8] sm:$0xff]  ;;  %vm58_vm0 = vcmask 392192   ;;  %vm84_vm1 = vcmask 261120  }
   0x4   :  { %v129_v3 = vld [vmem:[%s215_s0] sm:$0xff]  ;;  %s167_s1 = smov [#allocation2]   ;;  %s95_s26 = sshll.u32 %s218_s3, 4  ;;  %s96_s26 = int_to_ptr.hbm [resolvable:$true] %s95_s26 }
   0x5   :  { %v140_v5 = vld [vmem:[%s217_s2] ss:$0 sm:$0xff]  ;;  %s93_s0 = sshll.u32 %s167_s1, 4  ;;  %s168_s2 = smov 128   ;;  %s94_s0 = int_to_ptr.vmem [resolvable:$true] %s93_s0 }
   0x6   :  { %71 = vmatpush.bf16.msra.mxu0 %v132_v1  ;;  %135 = vmatpush.bf16.msra.mxu1 %v132_v1  ;;  %s169_s27 = smov 8  }
   0xa   :  { %72 = vmatpush.bf16.msra.mxu0 %v131_v2  ;;  %136 = vmatpush.bf16.msra.mxu1 %v131_v2 }
   0xd   :  { %127 = vmatmul.msk.bf16.vlgmr.msra.gmra.mxu0 %vm58_vm0, %v129_v3  ;;  %128 = vmatmul.msk.bf16.vlgmr.msra.gmra.mxu1 %vm58_vm0, %v130_v4 }
  0x8a   :  { %v74_v6 = vpop.f32.mrf.mxu0  ;;  %v79_v7 = vpop.f32.mrf.mxu1 }
  0x8b   :  { %v75_v8 = vadd.f32 %v140_v5, %v74_v6  ;;  %v80_v9 = vadd.f32 %v140_v5, %v79_v7 }
  0x8d   :  { %85 = vst.msk [vmem:[#allocation2] sm:$0xff] %vm84_vm1, %v75_v8 }
  0x8e   :  { %87 = vst.msk [vmem:[#allocation2 + $0x10] sm:$0xff] %vm84_vm1, %v80_v9 }
  0x92   :  { %v76_v10 = vpop.f32.mrf.mxu0  ;;  %v81_v11 = vpop.f32.mrf.mxu1 }
  0x93   :  { %v77_v12 = vadd.f32 %v140_v5, %v76_v10  ;;  %v82_v13 = vadd.f32 %v140_v5, %v81_v11 }
  0x95   :  { %86 = vst.msk [vmem:[#allocation2 + $0x8] sm:$0xff] %vm84_vm1, %v77_v12 }
  0x96   :  { %88 = vst.msk [vmem:[#allocation2 + $0x18] sm:$0xff] %vm84_vm1, %v82_v13 }
  0x97   :  { %101 = dma.vmem_to_hbm [thread:$0]  %s94_s0, 512, %s96_s26, [#allocation3], %s168_s2, %s168_s2, %s169_s27  }
  0x98   :  { %165 = dma.done.wait [#allocation3], 512  }
  0x99   :  { %166 = vsyncadd [#allocation3], 4294966784 }
  0x9a   :  { %106 = vsyncpa [#allocation3], 1 }

</bundles_post_ra>
